<compile_context>
chip_gen: v5e
topology: v5e:2x2
jax: 0.10.0
libtpu: 0.0.40
codegen_flags: <defaults>
</compile_context>

<pallas_src>
import jax
import jax.numpy as jnp
from jax import lax
from jax.experimental import pallas as pl
from jax.experimental.pallas import tpu as pltpu

HIDDEN = 1000          # hidden width of the PyTorch module's fc
HIDDEN_PAD = 1024      # lane-aligned padded hidden width


# ---------------------------------------------------------------------------
# One-time parameter preparation (hoisted out of the forward pass)
# ---------------------------------------------------------------------------
def prepare_params(w1, w2, hw):
    """Pad hidden dim 1000 -> 1024 (exact: relu(0)=0, padded W2 cols are zero),
    fold the 1/(H*W) average-pool scale into W1, keep the caller's dtype."""
    dt1, dt2 = w1.dtype, w2.dtype
    w1p = (jnp.pad(w1, ((0, HIDDEN_PAD - HIDDEN), (0, 0))) * (1.0 / float(hw))).astype(dt1)
    w2p = jnp.pad(w2, ((0, 0), (0, HIDDEN_PAD - HIDDEN))).astype(dt2)
    return w1p, w2p


def _vmem_capacity_bytes():
    try:
        return int(pltpu.get_tpu_info().vmem_capacity_bytes)
    except Exception:
        return 64 << 20   # conservative default (v7x per-TensorCore VMEM)


# ---------------------------------------------------------------------------
# Kernels
# ---------------------------------------------------------------------------
def _gate_from_pooled(pooled_f32, w1_ref, w2_ref):
    """sigmoid(W2 @ relu(W1 @ pooled)) with f32 MXU accumulation."""
    p = pooled_f32.astype(w1_ref.dtype)                                   # (C, 1)
    h = jnp.dot(w1_ref[...], p, preferred_element_type=jnp.float32)       # (Hp, 1)
    h = jnp.maximum(h, 0.0).astype(w2_ref.dtype)
    y = jnp.dot(w2_ref[...], h, preferred_element_type=jnp.float32)       # (C, 1)
    return 1.0 / (1.0 + jnp.exp(-y))                                      # f32 (C, 1)


def _fused_kernel(x_ref, w1_ref, w2_ref, o_ref):
    # x_ref: (1, C, HW) — one batch element, resident in VMEM.
    x = x_ref[0]                                                          # native dtype
    # Global average pool: f32 accumulation over the lane axis; the 1/HW scale
    # is pre-folded into W1, so a plain sum suffices.
    pooled = jnp.sum(x, axis=1, keepdims=True, dtype=jnp.float32)         # (C, 1)
    s = _gate_from_pooled(pooled, w1_ref, w2_ref)                         # (C, 1) f32
    # Rescale in the input dtype (no full-width f32 copy of the slab).
    o_ref[0] = x * s.astype(x.dtype)


def _pool_mlp_kernel(x_ref, w1_ref, w2_ref, gate_ref, acc_ref):
    # grid = (N, HW_tiles); accumulate the pool over t, emit the gate at the end.
    t = pl.program_id(1)

    @pl.when(t == 0)
    def _():
        acc_ref[...] = jnp.zeros_like(acc_ref)

    acc_ref[...] += jnp.sum(x_ref[0], axis=1, keepdims=True, dtype=jnp.float32)

    @pl.when(t == pl.num_programs(1) - 1)
    def _():
        gate_ref[0] = _gate_from_pooled(acc_ref[...], w1_ref, w2_ref)


def _rescale_kernel(x_ref, gate_ref, o_ref):
    x = x_ref[0]                                                          # (C, t)
    o_ref[0] = x * gate_ref[0].astype(x.dtype)                            # gate: (C, 1)


# ---------------------------------------------------------------------------
# Wrapper with VMEM-budget-aware dispatch
# ---------------------------------------------------------------------------
def _pick_hw_tile(hw, per_lane_bytes, fixed_bytes, budget):
    """Largest divisor of hw (multiple of 128, or hw itself) whose footprint fits."""
    for ntiles in range(1, hw + 1):
        if hw % ntiles:
            continue
        tile = hw // ntiles
        if tile != hw and tile % 128 != 0:
            continue                       # keep loads/stores lane-dense (unmasked vst)
        if fixed_bytes + per_lane_bytes * tile <= budget:
            return tile
    return None


def attention_forward(x_nchw, w1p, w2p, *, force_two_pass=False, hw_tile=None):
    """out = x * sigmoid(W2 @ relu(W1 @ avgpool(x))) with prepared weights."""
    N, C, H, W = x_nchw.shape
    HW = H * W
    x2 = x_nchw.reshape(N, C, HW)                  # contiguous reshape, no data movement

    itemsize = x2.dtype.itemsize
    w_bytes = HIDDEN_PAD * C * (w1p.dtype.itemsize + w2p.dtype.itemsize)
    cap = _vmem_capacity_bytes()
    budget = (cap * 2) // 3                        # headroom for compiler scratch/sems

    # Fused single-slab footprint: 2x double-buffered activation block (in + out)
    # + double-buffered weights (constant index_map -> DMA'd once, 2 bufs allocated).
    slab_bytes = C * HW * itemsize
    fused_need = 4 * slab_bytes + 2 * w_bytes + (1 << 20)

    use_fused = (not force_two_pass) and fused_need <= budget

    if not use_fused:
        t1 = hw_tile or _pick_hw_tile(HW, per_lane_bytes=2 * C * itemsize,
                                      fixed_bytes=2 * w_bytes + (1 << 20), budget=budget)
        t2 = hw_tile or _pick_hw_tile(HW, per_lane_bytes=4 * C * itemsize,
                                      fixed_bytes=(1 << 20), budget=budget)
        if t1 is None or t2 is None:
            # TODO(synk): no lane-aligned divisor of H*W fits the VMEM budget;
            # fall back to the fused slab with the limit opened to capacity.
            use_fused = True

    if use_fused:
        limit = int(min(cap, max(fused_need + (4 << 20), 32 << 20)))
        out = pl.pallas_call(
            _fused_kernel,
            out_shape=jax.ShapeDtypeStruct((N, C, HW), x2.dtype),
            grid=(N,),
            in_specs=[
                pl.BlockSpec((1, C, HW), lambda n: (n, 0, 0)),
                pl.BlockSpec((HIDDEN_PAD, C), lambda n: (0, 0)),   # fetched once
                pl.BlockSpec((C, HIDDEN_PAD), lambda n: (0, 0)),   # fetched once
            ],
            out_specs=pl.BlockSpec((1, C, HW), lambda n: (n, 0, 0)),
            compiler_params=pltpu.CompilerParams(
                dimension_semantics=("parallel",),
                vmem_limit_bytes=limit),
        )(x2, w1p, w2p)
        return out.reshape(N, C, H, W)

    # ----- pass 1: global average pool + MLP gate -> (N, C, 1) f32 -----
    need1 = 2 * C * t1 * itemsize + 2 * w_bytes + (2 << 20)
    gate = pl.pallas_call(
        _pool_mlp_kernel,
        out_shape=jax.ShapeDtypeStruct((N, C, 1), jnp.float32),
        grid=(N, HW // t1),
        in_specs=[
            pl.BlockSpec((1, C, t1), lambda n, t: (n, 0, t)),
            pl.BlockSpec((HIDDEN_PAD, C), lambda n, t: (0, 0)),
            pl.BlockSpec((C, HIDDEN_PAD), lambda n, t: (0, 0)),
        ],
        out_specs=pl.BlockSpec((1, C, 1), lambda n, t: (n, 0, 0)),
        scratch_shapes=[pltpu.VMEM((C, 1), jnp.float32)],
        compiler_params=pltpu.CompilerParams(
            dimension_semantics=("parallel", "arbitrary"),
            vmem_limit_bytes=int(min(cap, max(need1, 32 << 20)))),
    )(x2, w1p, w2p)

    # ----- pass 2: HW-tiled channel rescale (fully parallel, lane-dense) -----
    need2 = 4 * C * t2 * itemsize + (2 << 20)
    out = pl.pallas_call(
        _rescale_kernel,
        out_shape=jax.ShapeDtypeStruct((N, C, HW), x2.dtype),
        grid=(N, HW // t2),
        in_specs=[
            pl.BlockSpec((1, C, t2), lambda n, t: (n, 0, t)),
            pl.BlockSpec((1, C, 1), lambda n, t: (n, 0, 0)),
        ],
        out_specs=pl.BlockSpec((1, C, t2), lambda n, t: (n, 0, t)),
        compiler_params=pltpu.CompilerParams(
            dimension_semantics=("parallel", "parallel"),
            vmem_limit_bytes=int(min(cap, max(need2, 32 << 20)))),
    )(x2, gate)
    return out.reshape(N, C, H, W)


# ---------------------------------------------------------------------------
# Deterministic parameter init (PyTorch layout: Linear(C,1000) and Linear(1000,C))
# ---------------------------------------------------------------------------
def init_params(key, c, dtype=jnp.float32):
    k1, k2 = jax.random.split(key)
    w1 = (0.1 * jax.random.normal(k1, (HIDDEN, c))).astype(dtype)
    w2 = (0.1 * jax.random.normal(k2, (c, HIDDEN))).astype(dtype)
    return w1, w2


# ---------------------------------------------------------------------------
# Pure-JAX reference
# ---------------------------------------------------------------------------
def reference_attention(x, w1, w2):
    prec = lax.Precision.HIGHEST
    p = jnp.mean(x.astype(jnp.float32), axis=(2, 3))                       # (N, C)
    h = jnp.maximum(jnp.dot(p, w1.astype(jnp.float32).T, precision=prec), 0.0)
    y = 1.0 / (1.0 + jnp.exp(-jnp.dot(h, w2.astype(jnp.float32).T, precision=prec)))
    return x * y[:, :, None, None].astype(x.dtype)


if __name__ == "__main__":
    key = jax.random.PRNGKey(0)
    kx, kp = jax.random.split(key)

    N, C, H, W = 2, 4, 16, 16                      # small NCHW input (PyTorch layout)
    x = jax.random.normal(kx, (N, C, H, W), jnp.float32)
    w1, w2 = init_params(kp, C)
    w1p, w2p = prepare_params(w1, w2, H * W)       # one-time prep, outside the forward

    ref = reference_attention(x, w1, w2)

    # Fused single-slab path (the common case).
    out_fused = jax.block_until_ready(attention_forward(x, w1p, w2p))
    assert out_fused.shape == (N, C, H, W), out_fused.shape
    err = float(jnp.max(jnp.abs(out_fused - ref)))
    assert err < 5e-4, f"fused path max abs err {err}"

    # Also exercise the two-pass VMEM-fallback path (HW tiled at 128 lanes).
    out_tiled = jax.block_until_ready(
        attention_forward(x, w1p, w2p, force_two_pass=True, hw_tile=128))
    err = float(jnp.max(jnp.abs(out_tiled - ref)))
    assert err < 5e-4, f"two-pass path max abs err {err}"

    print("KERNEL_OK")
</pallas_src>

<mosaic_0001>
module attributes {stable_mosaic.version = 11 : i64} {
  func.func @_fused_kernel(%arg0: i32, %arg1: memref<1x4x256xf32, #tpu.memory_space<vmem>>, %arg2: memref<1024x4xf32, #tpu.memory_space<vmem>>, %arg3: memref<4x1024xf32, #tpu.memory_space<vmem>>, %arg4: memref<1x4x256xf32, #tpu.memory_space<vmem>>) attributes {dimension_semantics = [#tpu.dimension_semantics<parallel>], iteration_bounds = array<i64: 2>, scalar_prefetch = 0 : i64, scratch_operands = 0 : i64, tpu.core_type = #tpu.core_type<tc>, window_params = [{transform_indices = @transform_0, window_bounds = array<i64: 1, 4, 256>}, {pipeline_mode = #tpu.pipeline_mode<synchronous>, transform_indices = @transform_1, window_bounds = array<i64: 1024, 4>}, {pipeline_mode = #tpu.pipeline_mode<synchronous>, transform_indices = @transform_2, window_bounds = array<i64: 4, 1024>}, {transform_indices = @transform_3, window_bounds = array<i64: 1, 4, 256>}]} {
    %c0 = arith.constant 0 : index
    %c0_0 = arith.constant 0 : index
    %c0_1 = arith.constant 0 : index
    %0 = vector.load %arg1[%c0, %c0_0, %c0_1] : memref<1x4x256xf32, #tpu.memory_space<vmem>>, vector<1x4x256xf32>
    %1 = vector.shape_cast %0 : vector<1x4x256xf32> to vector<4x256xf32>
    %cst = arith.constant dense<0.000000e+00> : vector<4xf32>
    %2 = vector.multi_reduction <add>, %1, %cst [1] : vector<4x256xf32> to vector<4xf32>
    %3 = vector.shape_cast %2 : vector<4xf32> to vector<4x1xf32>
    %c0_2 = arith.constant 0 : index
    %c0_3 = arith.constant 0 : index
    %4 = vector.load %arg2[%c0_2, %c0_3] : memref<1024x4xf32, #tpu.memory_space<vmem>>, vector<1024x4xf32>
    %cst_4 = arith.constant dense<0.000000e+00> : vector<1024x1xf32>
    %5 = tpu.matmul %4, %3, %cst_4 {dimension_numbers = #tpu.dot_dimension_numbers<[1], [0], [0], [1], [0, 0, 1, 1], [], []>} : vector<1024x4xf32>, vector<4x1xf32>, vector<1024x1xf32> -> vector<1024x1xf32>
    %cst_5 = arith.constant 0.000000e+00 : f32
    %6 = vector.broadcast %cst_5 : f32 to vector<1024x1xf32>
    %7 = arith.maximumf %5, %6 : vector<1024x1xf32>
    %c0_6 = arith.constant 0 : index
    %c0_7 = arith.constant 0 : index
    %8 = vector.load %arg3[%c0_6, %c0_7] : memref<4x1024xf32, #tpu.memory_space<vmem>>, vector<4x1024xf32>
    %cst_8 = arith.constant dense<0.000000e+00> : vector<4x1xf32>
    %9 = tpu.matmul %8, %7, %cst_8 {dimension_numbers = #tpu.dot_dimension_numbers<[1], [0], [0], [1], [0, 0, 1, 1], [], []>} : vector<4x1024xf32>, vector<1024x1xf32>, vector<4x1xf32> -> vector<4x1xf32>
    %cst_9 = arith.constant 0.000000e+00 : f32
    %10 = vector.broadcast %cst_9 : f32 to vector<4x1xf32>
    %11 = arith.subf %10, %9 : vector<4x1xf32>
    %12 = math.exp %11 : vector<4x1xf32>
    %cst_10 = arith.constant 1.000000e+00 : f32
    %13 = vector.broadcast %cst_10 : f32 to vector<4x1xf32>
    %14 = arith.addf %13, %12 : vector<4x1xf32>
    %cst_11 = arith.constant 1.000000e+00 : f32
    %15 = vector.broadcast %cst_11 : f32 to vector<4x1xf32>
    %16 = arith.divf %15, %14 : vector<4x1xf32>
    %17 = vector.broadcast %16 : vector<4x1xf32> to vector<4x256xf32>
    %18 = arith.mulf %1, %17 : vector<4x256xf32>
    %c0_12 = arith.constant 0 : index
    %c0_13 = arith.constant 0 : index
    %c0_14 = arith.constant 0 : index
    %19 = vector.load %arg4[%c0_12, %c0_13, %c0_14] : memref<1x4x256xf32, #tpu.memory_space<vmem>>, vector<1x4x256xf32>
    %20 = vector.shape_cast %19 : vector<1x4x256xf32> to vector<4x256xf32>
    %21 = vector.shape_cast %18 : vector<4x256xf32> to vector<1x4x256xf32>
    tpu.vector_store %arg4[%c0_12, %c0_13, %c0_14], %21 {strides = array<i32>} : memref<1x4x256xf32, #tpu.memory_space<vmem>>, vector<1x4x256xf32>,
    return
  }
  func.func @transform_0(%arg0: i32) -> (i32, i32, i32) {
    %c0_i32 = arith.constant 0 : i32
    %c0_i32_0 = arith.constant 0 : i32
    %c0_i32_1 = arith.constant 0 : i32
    return %arg0, %c0_i32, %c0_i32_0 : i32, i32, i32
  }
  func.func @transform_1(%arg0: i32) -> (i32, i32) {
    %c0_i32 = arith.constant 0 : i32
    %c0_i32_0 = arith.constant 0 : i32
    %c0_i32_1 = arith.constant 0 : i32
    return %c0_i32, %c0_i32_0 : i32, i32
  }
  func.func @transform_2(%arg0: i32) -> (i32, i32) {
    %c0_i32 = arith.constant 0 : i32
    %c0_i32_0 = arith.constant 0 : i32
    %c0_i32_1 = arith.constant 0 : i32
    return %c0_i32, %c0_i32_0 : i32, i32
  }
  func.func @transform_3(%arg0: i32) -> (i32, i32, i32) {
    %c0_i32 = arith.constant 0 : i32
    %c0_i32_0 = arith.constant 0 : i32
    %c0_i32_1 = arith.constant 0 : i32
    return %arg0, %c0_i32, %c0_i32_0 : i32, i32, i32
  }
}

</mosaic_0001>

<bundles_post_ra>
// kernel: tpu_custom_call.1
= control target key start
LH: loop header
LB: loop body
LE: loop exit
PB: predicated region body
PF: predicated region fallthrough
CT: control target
= control target key end

     0   :  { %8 = vsyncpa [#allocation3], 0  ;;  %s2715_s0 = inlined_call_operand.vmem [shape: f32[2,4,256], index: 0, kind: input, shape index: {}]   ;;  %s2716_s1 = inlined_call_operand.vmem [shape: f32[1024,4], index: 1, kind: input, shape index: {}]   ;;  %s2717_s2 = inlined_call_operand.vmem [shape: f32[4,1024], index: 2, kind: input, shape index: {}]   ;;  %s2718_s3 = inlined_call_operand.hbm [shape: f32[2,4,256], index: 3, kind: output, shape index: {}]  }
   0x1   :  { %10 = vsyncpa [#allocation3 + $0x1], 0  ;;  %s1802_s12 = smov 0   ;;  %s1804_s13 = smov 0  }
   0x2   :  { %s1806_s14 = smov 0   ;;  %s1808_s15 = smov 0  }
   0x3 LB: > { %s1823_s16 = sadd.s32 4294967295, %s1778_s15   ;;  %s1524_s17 = sadd.s32 4294967294, %s1778_s15   ;;  %s1778_s15 = sphi %s1808_s15, %s2731_s15   ;;  %s1774_s14 = sphi %s1806_s14, %s2730_s14   ;;  %s1770_s13 = sphi %s1804_s13, %s2729_s13   ;;  %s1766_s12 = sphi %s1802_s12, %s2728_s12  }
   0x4   : > { %s1827_s18 = sadd.s32 1, %s1778_s15   ;;  %s91_s19 = sadd.s32 1, %s1774_s14 }
   0x5   : > { %s88_s20 = ssub.s32 %s1778_s15, %s1827_s18  ;;  %p101_p0 = scmp.ne.s32.totalorder %s1774_s14, %s1770_s13 }
   0x6   : > { %p89_p1 = scmp.eq.s32.totalorder %s88_s20, 0  ;;  %p102_p2 = scmp.eq.s32.totalorder %s1823_s16, 1 }
   0x7   : > { %p107_p3 = scmp.ne.s32.totalorder %s1770_s13, %s1766_s12  ;;  %p108_p4 = scmp.eq.s32.totalorder %s1524_s17, 1 }
   0x8   : > { %s1838_s21 = scalar_select %p89_p1, %s1774_s14, %s91_s19  }
   0x9   : > { %p1840_p5 = por %p102_p2, %p101_p0  ;;  %p1844_p6 = por %p108_p4, %p107_p3 }
   0xa   : > { %p1527_p7 = scmp.ge.s32.totalorder %s1778_s15, 1  ;;  %p140_p8 = scmp.lt.s32.totalorder %s1778_s15, 3 }
   0xc   : > { %p141_p9 = pnand %p1527_p7, %p140_p8 }
   0xe   : > { %144 = sbr.rel (%p141_p9) target bundleno = 933 (0x3a5), region = 32 }
  0x13   : > { %p164_p10 = scmp.lt.s32.totalorder %s1823_s16, 1  ;;  %vm176_vm0 = vcmask 1043456   ;;  %v1227_v1 = vld [vmem:[%s2717_s2] sm:$0xff]  ;;  %vm310_vm1 = vcmask 31744   ;;  %v183_v10 = vld [vmem:[%s2716_s1 + $0x8] sm:$0xff]  ;;  %v276_v12 = vld [vmem:[%s2716_s1 + $0x2f0] sm:$0xff] }
  0x14   : > { %v182_v8 = vld [vmem:[%s2716_s1] sm:$0xff]  ;;  %v223_v11 = vld [vmem:[%s2716_s1 + $0x148] sm:$0xff]  ;;  %v184_v13 = vld [vmem:[%s2716_s1 + $0x10] sm:$0xff]  ;;  %s161_s20 = sand.u32 1, %s1770_s13   ;;  %s1736_s9 = scalar_lea.hbm %s2718_s3, 16 }
  0x15   : > { %s165_s24 = scalar_select %p164_p10, %s1823_s16, 1  ;;  %v222_v9 = vld [vmem:[%s2716_s1 + $0x140] sm:$0xff]  ;;  %v224_v14 = vld [vmem:[%s2716_s1 + $0x150] sm:$0xff]  ;;  %v277_v15 = vld [vmem:[%s2716_s1 + $0x2f8] sm:$0xff] }
  0x16   : > { %v185_v16 = vld [vmem:[%s2716_s1 + $0x18] sm:$0xff]  ;;  %v278_v18 = vld [vmem:[%s2716_s1 + $0x300] sm:$0xff]  ;;  %v279_v21 = vld [vmem:[%s2716_s1 + $0x308] sm:$0xff]  ;;  %s1449_s5 = scalar_lea.sflag [#allocation3], %s161_s20 }
  0x17   : > { %s1665_s25 = sshll.u32 %s165_s24, 3  ;;  %v225_v17 = vld [vmem:[%s2716_s1 + $0x158] sm:$0xff]  ;;  %v186_v19 = vld [vmem:[%s2716_s1 + $0x20] sm:$0xff]  ;;  %v187_v22 = vld [vmem:[%s2716_s1 + $0x28] sm:$0xff]  ;;  %s1528_s24 = sshll.u32 %s161_s20, 3 }
  0x18   : > { %s168_s28 = scalar_lea.vmem %s2715_s0, %s1665_s25  ;;  %v226_v20 = vld [vmem:[%s2716_s1 + $0x160] sm:$0xff]  ;;  %v227_v23 = vld [vmem:[%s2716_s1 + $0x168] sm:$0xff]  ;;  %v280_v24 = vld [vmem:[%s2716_s1 + $0x310] sm:$0xff]  ;;  %s1666_s25 = sshll.u32 %s1823_s16, 3 }
  0x19   : > { %v1855_v0 = vld [vmem:[%s168_s28] sm:$0xff]  ;;  %v188_v25 = vld [vmem:[%s2716_s1 + $0x30] sm:$0xff]  ;;  %v281_v27 = vld [vmem:[%s2716_s1 + $0x318] sm:$0xff]  ;;  %s1460_s28 = scalar_lea.hbm %s2718_s3, %s1666_s25  ;;  %s163_s29 = scalar_lea.vmem [#allocation2], %s1528_s24 }
  0x1a   : > { %2722 = vst [vmem:[#allocation5_spill] sm:$0xff] %v1855_v0  ;;  %v228_v26 = vld [vmem:[%s2716_s1 + $0x170] sm:$0xff]  ;;  %v189_v28 = vld [vmem:[%s2716_s1 + $0x38] sm:$0xff]  ;;  %v282_v30 = vld [vmem:[%s2716_s1 + $0x320] sm:$0xff]  ;;  %s1462_s30 = sshll.u32 %s163_s29, 4  ;;  %s1464_s4 = sshll.u32 %s1460_s28, 4  ;;  %s1463_s30 = int_to_ptr.vmem [resolvable:$true] %s1462_s30  ;;  %s1465_s4 = int_to_ptr.hbm [resolvable:$true] %s1464_s4 }
  0x1b   : > { %171 = vst [vmem:[#allocation1] ss:$2 sm:$0xff] %v1855_v0  ;;  %v229_v29 = vld [vmem:[%s2716_s1 + $0x178] sm:$0xff]  ;;  %v190_v31 = vld [vmem:[%s2716_s1 + $0x40] sm:$0xff]  ;;  %v283_v33 = vld [vmem:[%s2716_s1 + $0x328] sm:$0xff]  ;;  %s1730_s6 = sshra.s32 %s1465_s4, 4  ;;  %s1731_s6 = int_to_ptr.hbm [resolvable:$true] %s1730_s6 }
  0x1c   : > { %v230_v32 = vld [vmem:[%s2716_s1 + $0x180] sm:$0xff]  ;;  %v191_v34 = vld [vmem:[%s2716_s1 + $0x48] sm:$0xff]  ;;  %v284_v36 = vld [vmem:[%s2716_s1 + $0x330] sm:$0xff]  ;;  %s1732_s16 = scalar_lea.hbm %s1731_s6, 8  ;;  %p1737_p0 = scmp.lt.s32.totalorder %s1731_s6, %s2718_s3 }
  0x1d   : > { %v231_v35 = vld [vmem:[%s2716_s1 + $0x188] sm:$0xff]  ;;  %v192_v37 = vld [vmem:[%s2716_s1 + $0x50] sm:$0xff]  ;;  %v285_v39 = vld [vmem:[%s2716_s1 + $0x338] sm:$0xff]  ;;  %p1733_p11 = scmp.ne.s32.totalorder %s1731_s6, %s1732_s16  ;;  %p1738_p1 = scmp.lt.s32.totalorder %s1736_s9, %s1732_s16 }
  0x1e   : > { %v232_v38 = vld [vmem:[%s2716_s1 + $0x190] sm:$0xff]  ;;  %v193_v40 = vld [vmem:[%s2716_s1 + $0x58] sm:$0xff]  ;;  %v286_v42 = vld [vmem:[%s2716_s1 + $0x340] sm:$0xff] }
  0x1f   : > { %v233_v41 = vld [vmem:[%s2716_s1 + $0x198] sm:$0xff]  ;;  %v194_v43 = vld [vmem:[%s2716_s1 + $0x60] sm:$0xff]  ;;  %v287_v45 = vld [vmem:[%s2716_s1 + $0x348] sm:$0xff]  ;;  %p1734_p12 = pnand %p1733_p11, %p1840_p5  ;;  %p1739_p2 = por %p1738_p1, %p1737_p0 }
  0x20   : > { %v234_v44 = vld [vmem:[%s2716_s1 + $0x1a0] sm:$0xff]  ;;  %v251_v46 = vld [vmem:[%s2716_s1 + $0x228] sm:$0xff]  ;;  %v288_v49 = vld [vmem:[%s2716_s1 + $0x350] sm:$0xff] }
  0x21   : > { %v195_v47 = vld [vmem:[%s2716_s1 + $0x68] sm:$0xff]  ;;  %v252_v50 = vld [vmem:[%s2716_s1 + $0x230] sm:$0xff]  ;;  %v289_v53 = vld [vmem:[%s2716_s1 + $0x358] sm:$0xff]  ;;  %p1735_p13 = pneg %p1734_p12 }
  0x22   : > { %v172_v2 = vld.sshfl [vmem:[#allocation1] sm:$0xff pattern:$0x75316420]  ;;  %v173_v3 = vld.sshfl [vmem:[#allocation1 + $0x8] sm:$0xff pattern:$0x75316420] }
  0x23   : > { %v177_v4 = vsel %vm176_vm0, %v172_v2, 0.0  ;;  %v178_v5 = vsel %vm176_vm0, %v173_v3, 0.0  ;;  %1235 = vst [vmem:[#allocation1] ss:$2 sm:$0xff] %v1227_v1  ;;  %v235_v48 = vld [vmem:[%s2716_s1 + $0x1a8] sm:$0xff]  ;;  %v196_v51 = vld [vmem:[%s2716_s1 + $0x70] sm:$0xff]  ;;  %p1740_p3 = pnand %p1739_p2, %p1735_p13 }
  0x24   : > { %v179_v6 = vadd.f32 %v178_v5, %v177_v4  ;;  %v236_v52 = vld [vmem:[%s2716_s1 + $0x1b0] sm:$0xff]  ;;  %v253_v54 = vld [vmem:[%s2716_s1 + $0x238] sm:$0xff]  ;;  %v290_v57 = vld [vmem:[%s2716_s1 + $0x360] sm:$0xff] }
  0x25   : > { %v197_v55 = vld [vmem:[%s2716_s1 + $0x78] sm:$0xff]  ;;  %v254_v58 = vld [vmem:[%s2716_s1 + $0x240] sm:$0xff]  ;;  %v291_v63 = vld [vmem:[%s2716_s1 + $0x368] sm:$0xff] }
  0x26   : > { %180 = vadd.xlane.f32.xlu0 %v179_v6  ;;  %v237_v56 = vld [vmem:[%s2716_s1 + $0x1b8] sm:$0xff]  ;;  %v198_v61 = vld [vmem:[%s2716_s1 + $0x80] sm:$0xff]  ;;  %v255_v1 = vld [vmem:[%s2716_s1 + $0x248] sm:$0xff] }
  0x27   : > { %v238_v62 = vld [vmem:[%s2716_s1 + $0x1c0] sm:$0xff]  ;;  %v199_v4 = vld [vmem:[%s2716_s1 + $0x88] sm:$0xff]  ;;  %v292_v6 = vld [vmem:[%s2716_s1 + $0x370] sm:$0xff] }
  0x28   : > { %v239_v5 = vld [vmem:[%s2716_s1 + $0x1c8] sm:$0xff] }
  0x99   : > { %v181_v7 = vpop.xlane.xlu0 %180 }
  0x9a   : > { %1531 = vmatpush.msk.msra.mxu0 %vm176_vm0, %v181_v7  ;;  %1667 = vmatpush.msk.msra.mxu1 %vm176_vm0, %v181_v7 }
  0x9b   : > { %1668 = vmatpush.msk.msra.mxu2 %vm176_vm0, %v181_v7  ;;  %1669 = vmatpush.msk.msra.mxu3 %vm176_vm0, %v181_v7 }
  0x9c   : > { %1532 = vmatmul.msk.f32.vlgmr.msra.gmra.mxu0 %vm310_vm1, %v182_v8  ;;  %1572 = vmatmul.msk.f32.vlgmr.msra.gmra.mxu1 %vm310_vm1, %v222_v9  ;;  %v256_v8 = vld [vmem:[%s2716_s1 + $0x250] sm:$0xff] }
  0x9d   : > { %1626 = vmatmul.msk.f32.vlgmr.msra.gmra.mxu3 %vm310_vm1, %v276_v12  ;;  %1601 = vmatmul.msk.f32.vlgmr.msra.gmra.mxu2 %vm310_vm1, %v251_v46  ;;  %v240_v12 = vld [vmem:[%s2716_s1 + $0x1d0] sm:$0xff]  ;;  %v205_v46 = vld [vmem:[%s2716_s1 + $0xb8] sm:$0xff] }
  0xa4   : > { %1533 = vmatmul.msk.f32.gmra.mxu0 %vm310_vm1, %v183_v10  ;;  %1573 = vmatmul.msk.f32.gmra.mxu1 %vm310_vm1, %v223_v11  ;;  %v200_v11 = vld [vmem:[%s2716_s1 + $0x90] sm:$0xff] }
  0xa5   : > { %1627 = vmatmul.msk.f32.gmra.mxu3 %vm310_vm1, %v277_v15  ;;  %1602 = vmatmul.msk.f32.gmra.mxu2 %vm310_vm1, %v252_v50  ;;  %v257_v15 = vld [vmem:[%s2716_s1 + $0x258] sm:$0xff] }
  0xac   : > { %1534 = vmatmul.msk.f32.gmra.mxu0 %vm310_vm1, %v184_v13  ;;  %1574 = vmatmul.msk.f32.gmra.mxu1 %vm310_vm1, %v224_v14  ;;  %v293_v13 = vld [vmem:[%s2716_s1 + $0x378] sm:$0xff] }
  0xad   : > { %1628 = vmatmul.msk.f32.gmra.mxu3 %vm310_vm1, %v278_v18  ;;  %1603 = vmatmul.msk.f32.gmra.mxu2 %vm310_vm1, %v253_v54  ;;  %v201_v18 = vld [vmem:[%s2716_s1 + $0x98] sm:$0xff] }
  0xb4   : > { %1535 = vmatmul.msk.f32.gmra.mxu0 %vm310_vm1, %v185_v16  ;;  %1575 = vmatmul.msk.f32.gmra.mxu1 %vm310_vm1, %v225_v17 }
  0xb5   : > { %1629 = vmatmul.msk.f32.gmra.mxu3 %vm310_vm1, %v279_v21  ;;  %1604 = vmatmul.msk.f32.gmra.mxu2 %vm310_vm1, %v254_v58 }
  0xbc   : > { %1536 = vmatmul.msk.f32.gmra.mxu0 %vm310_vm1, %v186_v19  ;;  %1576 = vmatmul.msk.f32.gmra.mxu1 %vm310_vm1, %v226_v20  ;;  %v241_v19 = vld [vmem:[%s2716_s1 + $0x1d8] sm:$0xff]  ;;  %v294_v20 = vld [vmem:[%s2716_s1 + $0x380] sm:$0xff] }
  0xbd   : > { %1630 = vmatmul.msk.f32.gmra.mxu3 %vm310_vm1, %v280_v24  ;;  %1605 = vmatmul.msk.f32.gmra.mxu2 %vm310_vm1, %v255_v1 }
  0xc4   : > { %1537 = vmatmul.msk.f32.gmra.mxu0 %vm310_vm1, %v187_v22  ;;  %1577 = vmatmul.msk.f32.gmra.mxu1 %vm310_vm1, %v227_v23  ;;  %v258_v22 = vld [vmem:[%s2716_s1 + $0x260] sm:$0xff] }
  0xc5   : > { %1631 = vmatmul.msk.f32.gmra.mxu3 %vm310_vm1, %v281_v27  ;;  %1606 = vmatmul.msk.f32.gmra.mxu2 %vm310_vm1, %v256_v8  ;;  %v295_v27 = vld [vmem:[%s2716_s1 + $0x388] sm:$0xff] }
  0xcc   : > { %1538 = vmatmul.msk.f32.gmra.mxu0 %vm310_vm1, %v188_v25  ;;  %1578 = vmatmul.msk.f32.gmra.mxu1 %vm310_vm1, %v228_v26  ;;  %v202_v25 = vld [vmem:[%s2716_s1 + $0xa0] sm:$0xff] }
  0xcd   : > { %1632 = vmatmul.msk.f32.gmra.mxu3 %vm310_vm1, %v282_v30  ;;  %1607 = vmatmul.msk.f32.gmra.mxu2 %vm310_vm1, %v257_v15  ;;  %v242_v26 = vld [vmem:[%s2716_s1 + $0x1e0] sm:$0xff]  ;;  %v208_v15 = vld [vmem:[%s2716_s1 + $0xd0] sm:$0xff] }
  0xd4   : > { %1539 = vmatmul.msk.f32.gmra.mxu0 %vm310_vm1, %v189_v28  ;;  %1579 = vmatmul.msk.f32.gmra.mxu1 %vm310_vm1, %v229_v29  ;;  %v259_v29 = vld [vmem:[%s2716_s1 + $0x268] sm:$0xff] }
  0xd5   : > { %1633 = vmatmul.msk.f32.gmra.mxu3 %vm310_vm1, %v283_v33  ;;  %1608 = vmatmul.msk.f32.gmra.mxu2 %vm310_vm1, %v258_v22  ;;  %v243_v33 = vld [vmem:[%s2716_s1 + $0x1e8] sm:$0xff] }
  0xdc   : > { %1540 = vmatmul.msk.f32.gmra.mxu0 %vm310_vm1, %v190_v31  ;;  %1580 = vmatmul.msk.f32.gmra.mxu1 %vm310_vm1, %v230_v32  ;;  %v203_v32 = vld [vmem:[%s2716_s1 + $0xa8] sm:$0xff] }
  0xdd   : > { %1634 = vmatmul.msk.f32.gmra.mxu3 %vm310_vm1, %v284_v36  ;;  %1609 = vmatmul.msk.f32.gmra.mxu2 %vm310_vm1, %v259_v29  ;;  %v260_v36 = vld [vmem:[%s2716_s1 + $0x270] sm:$0xff] }
  0xe4   : > { %1541 = vmatmul.msk.f32.gmra.mxu0 %vm310_vm1, %v191_v34  ;;  %1581 = vmatmul.msk.f32.gmra.mxu1 %vm310_vm1, %v231_v35  ;;  %v296_v34 = vld [vmem:[%s2716_s1 + $0x390] sm:$0xff] }
  0xe5   : > { %1635 = vmatmul.msk.f32.gmra.mxu3 %vm310_vm1, %v285_v39  ;;  %v204_v39 = vld [vmem:[%s2716_s1 + $0xb0] sm:$0xff]  ;;  %1610 = vmatmul.msk.f32.gmra.mxu2 %vm310_vm1, %v260_v36  ;;  %v267_v36 = vld [vmem:[%s2716_s1 + $0x2a8] sm:$0xff] }
  0xec   : > { %1542 = vmatmul.msk.f32.gmra.mxu0 %vm310_vm1, %v192_v37  ;;  %1582 = vmatmul.msk.f32.gmra.mxu1 %vm310_vm1, %v232_v38 }
  0xed   : > { %1636 = vmatmul.msk.f32.gmra.mxu3 %vm310_vm1, %v286_v42 }
  0xf4   : > { %1543 = vmatmul.msk.f32.gmra.mxu0 %vm310_vm1, %v193_v40  ;;  %1583 = vmatmul.msk.f32.gmra.mxu1 %vm310_vm1, %v233_v41  ;;  %v244_v40 = vld [vmem:[%s2716_s1 + $0x1f0] sm:$0xff]  ;;  %v297_v41 = vld [vmem:[%s2716_s1 + $0x398] sm:$0xff] }
  0xf5   : > { %1637 = vmatmul.msk.f32.gmra.mxu3 %vm310_vm1, %v287_v45 }
  0xfc   : > { %1544 = vmatmul.msk.f32.gmra.mxu0 %vm310_vm1, %v194_v43  ;;  %1584 = vmatmul.msk.f32.gmra.mxu1 %vm310_vm1, %v234_v44  ;;  %v261_v43 = vld [vmem:[%s2716_s1 + $0x278] sm:$0xff] }
  0xfd   : > { %1638 = vmatmul.msk.f32.gmra.mxu3 %vm310_vm1, %v288_v49  ;;  %1611 = vmatmul.msk.f32.gmra.mxu2 %vm310_vm1, %v261_v43  ;;  %v298_v49 = vld [vmem:[%s2716_s1 + $0x3a0] sm:$0xff] }
 0x104   : > { %1545 = vmatmul.msk.f32.gmra.mxu0 %vm310_vm1, %v195_v47  ;;  %1585 = vmatmul.msk.f32.gmra.mxu1 %vm310_vm1, %v235_v48  ;;  %v245_v47 = vld [vmem:[%s2716_s1 + $0x1f8] sm:$0xff] }
 0x105   : > { %1639 = vmatmul.msk.f32.gmra.mxu3 %vm310_vm1, %v289_v53  ;;  %v262_v53 = vld [vmem:[%s2716_s1 + $0x280] sm:$0xff] }
 0x106   : > { %1612 = vmatmul.msk.f32.gmra.mxu2 %vm310_vm1, %v262_v53 }
 0x10c   : > { %1546 = vmatmul.msk.f32.gmra.mxu0 %vm310_vm1, %v196_v51  ;;  %1586 = vmatmul.msk.f32.gmra.mxu1 %vm310_vm1, %v236_v52 }
 0x10d   : > { %1640 = vmatmul.msk.f32.gmra.mxu3 %vm310_vm1, %v290_v57  ;;  %v206_v57 = vld [vmem:[%s2716_s1 + $0xc0] sm:$0xff] }
 0x114   : > { %1547 = vmatmul.msk.f32.gmra.mxu0 %vm310_vm1, %v197_v55  ;;  %1587 = vmatmul.msk.f32.gmra.mxu1 %vm310_vm1, %v237_v56 }
 0x115   : > { %1641 = vmatmul.msk.f32.gmra.mxu3 %vm310_vm1, %v291_v63 }
 0x119   : > { %v2070_v59 = vpop.f32.mrf.mxu0  ;;  %v2072_v60 = vpop.f32.mrf.mxu1 }
 0x11c   : > { %1548 = vmatmul.msk.f32.gmra.mxu0 %vm310_vm1, %v198_v61  ;;  %1588 = vmatmul.msk.f32.gmra.mxu1 %vm310_vm1, %v238_v62  ;;  %v299_v61 = vld [vmem:[%s2716_s1 + $0x3a8] sm:$0xff] }
 0x11d   : > { %1642 = vmatmul.msk.f32.gmra.mxu3 %vm310_vm1, %v292_v6 }
 0x120   : > { %v2107_v7 = vpop.f32.mrf.mxu3  ;;  %v2338_v43 = vpop.f32.mrf.mxu2 }
 0x121   : > { %v2090_v2 = vpop.f32.mrf.mxu0  ;;  %v2092_v3 = vpop.f32.mrf.mxu1 }
 0x122   : > { %v1140_v63 = vmax.f32 %v2092_v3, 0.0  ;;  %v300_v3 = vld [vmem:[%s2716_s1 + $0x3b0] sm:$0xff] }
 0x124   : > { %1549 = vmatmul.msk.f32.gmra.mxu0 %vm310_vm1, %v199_v4  ;;  %1589 = vmatmul.msk.f32.gmra.mxu1 %vm310_vm1, %v239_v5  ;;  %v263_v4 = vld [vmem:[%s2716_s1 + $0x288] sm:$0xff]  ;;  %v1139_v5 = vmax.f32 %v2072_v60, 0.0 }
 0x125   : > { %1643 = vmatmul.msk.f32.gmra.mxu3 %vm310_vm1, %v293_v13  ;;  %1613 = vmatmul.msk.f32.gmra.mxu2 %vm310_vm1, %v263_v4 }
 0x128   : > { %v2129_v14 = vpop.f32.mrf.mxu3  ;;  %v2360_v53 = vpop.f32.mrf.mxu2 }
 0x129   : > { %v2112_v9 = vpop.f32.mrf.mxu0  ;;  %v2114_v10 = vpop.f32.mrf.mxu1 }
 0x12a   : > { %v1141_v62 = vmax.f32 %v2114_v10, 0.0  ;;  %v207_v10 = vld [vmem:[%s2716_s1 + $0xc8] sm:$0xff] }
 0x12c   : > { %1550 = vmatmul.msk.f32.gmra.mxu0 %vm310_vm1, %v200_v11  ;;  %1590 = vmatmul.msk.f32.gmra.mxu1 %vm310_vm1, %v240_v12  ;;  %v264_v11 = vld [vmem:[%s2716_s1 + $0x290] sm:$0xff] }
 0x12d   : > { %1644 = vmatmul.msk.f32.gmra.mxu3 %vm310_vm1, %v294_v20  ;;  %1614 = vmatmul.msk.f32.gmra.mxu2 %vm310_vm1, %v264_v11 }
 0x130   : > { %v2151_v21 = vpop.f32.mrf.mxu3 }
 0x131   : > { %v2134_v16 = vpop.f32.mrf.mxu0  ;;  %v2136_v17 = vpop.f32.mrf.mxu1 }
 0x132   : > { %v1142_v58 = vmax.f32 %v2136_v17, 0.0  ;;  %v301_v17 = vld [vmem:[%s2716_s1 + $0x3b8] sm:$0xff] }
 0x134   : > { %1551 = vmatmul.msk.f32.gmra.mxu0 %vm310_vm1, %v201_v18  ;;  %1591 = vmatmul.msk.f32.gmra.mxu1 %vm310_vm1, %v241_v19  ;;  %v265_v19 = vld [vmem:[%s2716_s1 + $0x298] sm:$0xff] }
 0x135   : > { %1645 = vmatmul.msk.f32.gmra.mxu3 %vm310_vm1, %v295_v27  ;;  %1615 = vmatmul.msk.f32.gmra.mxu2 %vm310_vm1, %v265_v19  ;;  %v266_v27 = vld [vmem:[%s2716_s1 + $0x2a0] sm:$0xff]  ;;  %v248_v19 = vld [vmem:[%s2716_s1 + $0x210] sm:$0xff] }
 0x138   : > { %v2171_v28 = vpop.f32.mrf.mxu3 }
 0x139   : > { %v2156_v23 = vpop.f32.mrf.mxu0  ;;  %v847_v24 = vpop.f32.mrf.mxu1 }
 0x13a   : > { %v1143_v54 = vmax.f32 %v847_v24, 0.0  ;;  %v209_v24 = vld [vmem:[%s2716_s1 + $0xd8] sm:$0xff] }
 0x13c   : > { %1552 = vmatmul.msk.f32.gmra.mxu0 %vm310_vm1, %v202_v25  ;;  %1592 = vmatmul.msk.f32.gmra.mxu1 %vm310_vm1, %v242_v26  ;;  %v302_v25 = vld [vmem:[%s2716_s1 + $0x3c0] sm:$0xff] }
 0x13d   : > { %1646 = vmatmul.msk.f32.gmra.mxu3 %vm310_vm1, %v296_v34  ;;  %1616 = vmatmul.msk.f32.gmra.mxu2 %vm310_vm1, %v266_v27 }
 0x140   : > { %v2191_v35 = vpop.f32.mrf.mxu3 }
 0x141   : > { %v2176_v30 = vpop.f32.mrf.mxu0  ;;  %v850_v31 = vpop.f32.mrf.mxu1 }
 0x142   : > { %v1144_v51 = vmax.f32 %v850_v31, 0.0 }
 0x144   : > { %1553 = vmatmul.msk.f32.gmra.mxu0 %vm310_vm1, %v203_v32  ;;  %1593 = vmatmul.msk.f32.gmra.mxu1 %vm310_vm1, %v243_v33  ;;  %v210_v32 = vld [vmem:[%s2716_s1 + $0xe0] sm:$0xff]  ;;  %v303_v33 = vld [vmem:[%s2716_s1 + $0x3c8] sm:$0xff] }
 0x145   : > { %1647 = vmatmul.msk.f32.gmra.mxu3 %vm310_vm1, %v297_v41  ;;  %1617 = vmatmul.msk.f32.gmra.mxu2 %vm310_vm1, %v267_v36  ;;  %v304_v41 = vld [vmem:[%s2716_s1 + $0x3d0] sm:$0xff] }
 0x148   : > { %v2211_v42 = vpop.f32.mrf.mxu3 }
 0x149   : > { %v2196_v37 = vpop.f32.mrf.mxu0  ;;  %v853_v38 = vpop.f32.mrf.mxu1 }
 0x14a   : > { %v1145_v50 = vmax.f32 %v853_v38, 0.0 }
 0x14c   : > { %1554 = vmatmul.msk.f32.gmra.mxu0 %vm310_vm1, %v204_v39  ;;  %1594 = vmatmul.msk.f32.gmra.mxu1 %vm310_vm1, %v244_v40  ;;  %v211_v40 = vld [vmem:[%s2716_s1 + $0xe8] sm:$0xff] }
 0x14d   : > { %1648 = vmatmul.msk.f32.gmra.mxu3 %vm310_vm1, %v298_v49 }
 0x150   : > { %v2231_v52 = vpop.f32.mrf.mxu3 }
 0x151   : > { %v2216_v44 = vpop.f32.mrf.mxu0  ;;  %v856_v45 = vpop.f32.mrf.mxu1 }
 0x152   : > { %v1146_v48 = vmax.f32 %v856_v45, 0.0 }
 0x154   : > { %1555 = vmatmul.msk.f32.gmra.mxu0 %vm310_vm1, %v205_v46  ;;  %1595 = vmatmul.msk.f32.gmra.mxu1 %vm310_vm1, %v245_v47  ;;  %v246_v46 = vld [vmem:[%s2716_s1 + $0x200] sm:$0xff]  ;;  %v268_v47 = vld [vmem:[%s2716_s1 + $0x2b0] sm:$0xff] }
 0x155   : > { %1298 = vmatpush.msrb.mxu3 %v1146_v48  ;;  %1618 = vmatmul.msk.f32.gmra.mxu2 %vm310_vm1, %v268_v47 }
 0x156   : > { %1649 = vmatmul.msk.f32.gmra.mxu3 %vm310_vm1, %v299_v61 }
 0x157   : > { %1299 = vmatpush.msrb.mxu3 %v1145_v50  ;;  %v212_v50 = vld [vmem:[%s2716_s1 + $0xf0] sm:$0xff] }
 0x158   : > { %v2252_v1 = vpop.f32.mrf.mxu3 }
 0x159   : > { %v2236_v55 = vpop.f32.mrf.mxu0  ;;  %v2238_v56 = vpop.f32.mrf.mxu1  ;;  %1300 = vmatpush.msrb.mxu3 %v1144_v51  ;;  %v305_v51 = vld [vmem:[%s2716_s1 + $0x3d8] sm:$0xff] }
 0x15b   : > { %1301 = vmatpush.msrb.mxu3 %v1143_v54 }
 0x15c   : > { %1556 = vmatmul.msk.f32.gmra.mxu0 %vm310_vm1, %v206_v57  ;;  %1596 = vmatmul.msk.f32.gmra.mxu1 %vm310_vm1, %v246_v46  ;;  %v247_v57 = vld [vmem:[%s2716_s1 + $0x208] sm:$0xff]  ;;  %v249_v46 = vld [vmem:[%s2716_s1 + $0x218] sm:$0xff] }
 0x15d   : > { %1302 = vmatpush.msrb.mxu3 %v1142_v58  ;;  %v269_v58 = vld [vmem:[%s2716_s1 + $0x2b8] sm:$0xff] }
 0x15e   : > { %1650 = vmatmul.msk.f32.gmra.mxu3 %vm310_vm1, %v300_v3  ;;  %1619 = vmatmul.msk.f32.gmra.mxu2 %vm310_vm1, %v269_v58  ;;  %v2382_v3 = vpop.f32.mrf.mxu2  ;;  %v1104_v58 = vmax.f32 %v2176_v30, 0.0  ;;  %v216_v30 = vld [vmem:[%s2716_s1 + $0x110] sm:$0xff] }
 0x15f   : > { %1303 = vmatpush.msrb.mxu3 %v1141_v62 }
 0x160   : > { %v2271_v60 = vpop.f32.mrf.mxu3 }
 0x161   : > { %v2258_v6 = vpop.f32.mrf.mxu0  ;;  %v2260_v8 = vpop.f32.mrf.mxu1  ;;  %1304 = vmatpush.msrb.mxu3 %v1140_v63  ;;  %v213_v63 = vld [vmem:[%s2716_s1 + $0xf8] sm:$0xff] }
 0x163   : > { %1305 = vmatpush.msrb.mxu3 %v1139_v5  ;;  %v306_v5 = vld [vmem:[%s2716_s1 + $0x3e0] sm:$0xff] }
 0x164   : > { %1557 = vmatmul.msk.f32.gmra.mxu0 %vm310_vm1, %v207_v10  ;;  %1597 = vmatmul.msk.f32.gmra.mxu1 %vm310_vm1, %v247_v57 }
 0x166   : > { %1651 = vmatmul.msk.f32.gmra.mxu3 %vm310_vm1, %v301_v17 }
 0x168   : > { %v2289_v18 = vpop.f32.mrf.mxu3 }
 0x169   : > { %v2276_v12 = vpop.f32.mrf.mxu0  ;;  %v2278_v13 = vpop.f32.mrf.mxu1 }
 0x16a   : > { %v1109_v36 = vmax.f32 %v2276_v12, 0.0  ;;  %v271_v12 = vld [vmem:[%s2716_s1 + $0x2c8] sm:$0xff] }
 0x16c   : > { %1558 = vmatmul.msk.f32.gmra.mxu0 %vm310_vm1, %v208_v15  ;;  %1598 = vmatmul.msk.f32.gmra.mxu1 %vm310_vm1, %v248_v19  ;;  %v1100_v19 = vmax.f32 %v2090_v2, 0.0 }
 0x16e   : > { %1652 = vmatmul.msk.f32.gmra.mxu3 %vm310_vm1, %v302_v25 }
 0x170   : > { %v2307_v26 = vpop.f32.mrf.mxu3 }
 0x171   : > { %v2294_v20 = vpop.f32.mrf.mxu0  ;;  %v2296_v22 = vpop.f32.mrf.mxu1 }
 0x174   : > { %1559 = vmatmul.msk.f32.gmra.mxu0 %vm310_vm1, %v209_v24  ;;  %v270_v24 = vld [vmem:[%s2716_s1 + $0x2c0] sm:$0xff]  ;;  %1599 = vmatmul.msk.f32.gmra.mxu1 %vm310_vm1, %v249_v46 }
 0x175   : > { %1620 = vmatmul.msk.f32.gmra.mxu2 %vm310_vm1, %v270_v24  ;;  %v1099_v24 = vmax.f32 %v2070_v59, 0.0  ;;  %v218_v46 = vld [vmem:[%s2716_s1 + $0x120] sm:$0xff] }
 0x176   : > { %1653 = vmatmul.msk.f32.gmra.mxu3 %vm310_vm1, %v303_v33  ;;  %v307_v33 = vld [vmem:[%s2716_s1 + $0x3e8] sm:$0xff] }
 0x178   : > { %v2323_v34 = vpop.f32.mrf.mxu3 }
 0x179   : > { %v751_v29 = vpop.f32.mrf.mxu0  ;;  %v2312_v31 = vpop.f32.mrf.mxu1 }
 0x17a   : > { %v1111_v15 = vmax.f32 %v751_v29, 0.0  ;;  %v1110_v29 = vmax.f32 %v2294_v20, 0.0 }
 0x17c   : > { %1560 = vmatmul.msk.f32.gmra.mxu0 %vm310_vm1, %v210_v32  ;;  %v214_v32 = vld [vmem:[%s2716_s1 + $0x100] sm:$0xff] }
 0x17d   : > { %1621 = vmatmul.msk.f32.gmra.mxu2 %vm310_vm1, %v271_v12 }
 0x17e   : > { %1654 = vmatmul.msk.f32.gmra.mxu3 %vm310_vm1, %v304_v41  ;;  %v1107_v41 = vmax.f32 %v2236_v55, 0.0  ;;  %v1106_v55 = vmax.f32 %v2216_v44, 0.0 }
 0x180   : > { %v2341_v45 = vpop.f32.mrf.mxu3 }
 0x181   : > { %v754_v38 = vpop.f32.mrf.mxu0  ;;  %v2328_v39 = vpop.f32.mrf.mxu1 }
 0x182   : > { %v1112_v11 = vmax.f32 %v754_v38, 0.0  ;;  %v2408_v38 = vpop.f32.mrf.mxu2 }
 0x184   : > { %1561 = vmatmul.msk.f32.gmra.mxu0 %vm310_vm1, %v211_v40  ;;  %v1108_v40 = vmax.f32 %v2258_v6, 0.0  ;;  %v215_v6 = vld [vmem:[%s2716_s1 + $0x108] sm:$0xff] }
 0x186   : > { %1655 = vmatmul.msk.f32.gmra.mxu3 %vm310_vm1, %v305_v51  ;;  %v1105_v51 = vmax.f32 %v2196_v37, 0.0  ;;  %v272_v37 = vld [vmem:[%s2716_s1 + $0x2d0] sm:$0xff] }
 0x187   : > { %1622 = vmatmul.msk.f32.gmra.mxu2 %vm310_vm1, %v272_v37 }
 0x188   : > { %v2363_v54 = vpop.f32.mrf.mxu3 }
 0x189   : > { %v757_v48 = vpop.f32.mrf.mxu0  ;;  %v2349_v49 = vpop.f32.mrf.mxu1 }
 0x18a   : > { %v1113_v10 = vmax.f32 %v757_v48, 0.0  ;;  %v2436_v57 = vpop.f32.mrf.mxu2 }
 0x18c   : > { %1562 = vmatmul.msk.f32.gmra.mxu0 %vm310_vm1, %v212_v50  ;;  %v308_v50 = vld [vmem:[%s2716_s1 + $0x3f0] sm:$0xff] }
 0x18e   : > { %1656 = vmatmul.msk.f32.gmra.mxu3 %vm310_vm1, %v306_v5 }
 0x190   : > { %v2385_v17 = vpop.f32.mrf.mxu3 }
 0x191   : > { %v760_v61 = vpop.f32.mrf.mxu0  ;;  %v2371_v62 = vpop.f32.mrf.mxu1 }
 0x192   : > { %v1114_v4 = vmax.f32 %v760_v61, 0.0  ;;  %v1103_v61 = vmax.f32 %v2156_v23, 0.0  ;;  %v1102_v23 = vmax.f32 %v2134_v16, 0.0 }
 0x194   : > { %1563 = vmatmul.msk.f32.gmra.mxu0 %vm310_vm1, %v213_v63  ;;  %1258 = vmatpush.msrb.mxu1 %v1114_v4  ;;  %v250_v63 = vld [vmem:[%s2716_s1 + $0x220] sm:$0xff] }
 0x195   : > { %1600 = vmatmul.msk.f32.gmra.mxu1 %vm310_vm1, %v250_v63 }
 0x196   : > { %1259 = vmatpush.msrb.mxu1 %v1113_v10  ;;  %1657 = vmatmul.msk.f32.gmra.mxu3 %vm310_vm1, %v307_v33  ;;  %v309_v10 = vld [vmem:[%s2716_s1 + $0x3f8] sm:$0xff] }
 0x198   : > { %1260 = vmatpush.msrb.mxu1 %v1112_v11  ;;  %v2413_v20 = vpop.f32.mrf.mxu3  ;;  %v1101_v11 = vmax.f32 %v2112_v9, 0.0  ;;  %v217_v9 = vld [vmem:[%s2716_s1 + $0x118] sm:$0xff] }
 0x199   : > { %v2393_v25 = vpop.f32.mrf.mxu0  ;;  %v2395_v27 = vpop.f32.mrf.mxu1 }
 0x19a   : > { %1261 = vmatpush.msrb.mxu1 %v1111_v15  ;;  %v2464_v15 = vpop.f32.mrf.mxu2 }
 0x19c   : > { %1564 = vmatmul.msk.f32.gmra.mxu0 %vm310_vm1, %v214_v32  ;;  %1262 = vmatpush.msrb.mxu1 %v1110_v29  ;;  %v273_v32 = vld [vmem:[%s2716_s1 + $0x2d8] sm:$0xff] }
 0x19d   : > { %1623 = vmatmul.msk.f32.gmra.mxu2 %vm310_vm1, %v273_v32 }
 0x19e   : > { %1263 = vmatpush.msrb.mxu1 %v1109_v36  ;;  %1658 = vmatmul.msk.f32.gmra.mxu3 %vm310_vm1, %v308_v50  ;;  %v274_v36 = vld [vmem:[%s2716_s1 + $0x2e0] sm:$0xff] }
 0x1a0   : > { %1264 = vmatpush.msrb.mxu1 %v1108_v40  ;;  %v2441_v44 = vpop.f32.mrf.mxu3 }
 0x1a1   : > { %v2421_v47 = vpop.f32.mrf.mxu0  ;;  %v2423_v48 = vpop.f32.mrf.mxu1 }
 0x1a2   : > { %1265 = vmatpush.msrb.mxu1 %v1107_v41  ;;  %v2481_v2 = vpop.f32.mrf.mxu2 }
 0x1a4   : > { %1565 = vmatmul.msk.f32.gmra.mxu0 %vm310_vm1, %v215_v6  ;;  %1266 = vmatpush.msrb.mxu1 %v1106_v55  ;;  %v275_v55 = vld [vmem:[%s2716_s1 + $0x2e8] sm:$0xff] }
 0x1a5   : > { %1624 = vmatmul.msk.f32.gmra.mxu2 %vm310_vm1, %v274_v36  ;;  %v1242_v36 = vld.sshfl [vmem:[#allocation1] sm:$0xff pattern:$0x75316420] }
 0x1a6   : > { %1267 = vmatpush.msrb.mxu1 %v1105_v51  ;;  %1659 = vmatmul.msk.f32.gmra.mxu3 %vm310_vm1, %v309_v10 }
 0x1a8   : > { %1268 = vmatpush.msrb.mxu1 %v1104_v58  ;;  %v2469_v16 = vpop.f32.mrf.mxu3  ;;  %v219_v58 = vld [vmem:[%s2716_s1 + $0x128] sm:$0xff] }
 0x1a9   : > { %v2449_v4 = vpop.f32.mrf.mxu0  ;;  %v2451_v5 = vpop.f32.mrf.mxu1 }
 0x1aa   : > { %1269 = vmatpush.msrb.mxu1 %v1103_v61  ;;  %v2495_v12 = vpop.f32.mrf.mxu2 }
 0x1ac   : > { %1566 = vmatmul.msk.f32.gmra.mxu0 %vm310_vm1, %v216_v30  ;;  %1270 = vmatpush.msrb.mxu1 %v1102_v23  ;;  %v220_v23 = vld [vmem:[%s2716_s1 + $0x130] sm:$0xff] }
 0x1ad   : > { %1625 = vmatmul.msk.f32.gmra.mxu2 %vm310_vm1, %v275_v55 }
 0x1ae   : > { %1271 = vmatpush.msrb.mxu1 %v1101_v11 }
 0x1b0   : > { %1272 = vmatpush.msrb.mxu1 %v1100_v19  ;;  %v2483_v59 = vpop.f32.mrf.mxu3 }
 0x1b1   : > { %v2474_v29 = vpop.f32.mrf.mxu0  ;;  %v892_v33 = vpop.f32.mrf.mxu1  ;;  %2723 = vst [vmem:[#allocation6_spill] sm:$0xff] %v2483_v59 }
 0x1b2   : > { %1273 = vmatpush.msrb.mxu1 %v1099_v24  ;;  %v2509_v61 = vpop.f32.mrf.mxu2  ;;  %v221_v24 = vld [vmem:[%s2716_s1 + $0x138] sm:$0xff]  ;;  %v1158_v0 = vmax.f32 %v892_v33, 0.0 }
 0x1b3   : > { %1274 = vmatmul.f32.vlgmr.msrb.gmra.mxu1 %v1242_v36  ;;  %v1210_v36 = vmax.f32 %v2469_v16, 0.0  ;;  %v1205_v16 = vmax.f32 %v2341_v45, 0.0  ;;  %v1200_v45 = vmax.f32 %v2252_v1, 0.0  ;;  %v1195_v1 = vmax.f32 %v2151_v21, 0.0 }
 0x1b4   : > { %1567 = vmatmul.msk.f32.gmra.mxu0 %vm310_vm1, %v217_v9 }
 0x1b8   : > { %v2497_v6 = vpop.f32.mrf.mxu3 }
 0x1b9   : > { %v2488_v40 = vpop.f32.mrf.mxu0  ;;  %v895_v41 = vpop.f32.mrf.mxu1  ;;  %2724 = vst [vmem:[#allocation7_spill] sm:$0xff] %v2497_v6  ;;  %v1157_v6 = vmax.f32 %v2451_v5, 0.0  ;;  %v1152_v5 = vmax.f32 %v2328_v39, 0.0  ;;  %v1147_v39 = vmax.f32 %v2238_v56, 0.0  ;;  %v1206_v56 = vmax.f32 %v2363_v54, 0.0 }
 0x1ba   : > { %v2519_v10 = vpop.f32.mrf.mxu2  ;;  %v1201_v54 = vmax.f32 %v2271_v60, 0.0  ;;  %v1196_v60 = vmax.f32 %v2171_v28, 0.0 }
 0x1bc   : > { %1568 = vmatmul.msk.f32.gmra.mxu0 %vm310_vm1, %v218_v46 }
 0x1c0   : > { %v2511_v63 = vpop.f32.mrf.mxu3 }
 0x1c1   : > { %v2502_v50 = vpop.f32.mrf.mxu0  ;;  %v898_v51 = vpop.f32.mrf.mxu1 }
 0x1c2   : > { %v1160_v55 = vmax.f32 %v898_v51, 0.0  ;;  %v1155_v51 = vmax.f32 %v2395_v27, 0.0 }
 0x1c4   : > { %1569 = vmatmul.msk.f32.gmra.mxu0 %vm310_vm1, %v219_v58  ;;  %v2529_v58 = vpop.f32.mrf.mxu2 }
 0x1c8   : > { %v2526_v46 = vpop.f32.mrf.mxu3 }
 0x1c9   : > { %v2513_v37 = vpop.f32.mrf.mxu0  ;;  %v901_v30 = vpop.f32.mrf.mxu1 }
 0x1ca   : > { %v1161_v32 = vmax.f32 %v901_v30, 0.0  ;;  %v1156_v30 = vmax.f32 %v2423_v48, 0.0  ;;  %v1151_v48 = vmax.f32 %v2312_v31, 0.0 }
 0x1cc   : > { %1570 = vmatmul.msk.f32.gmra.mxu0 %vm310_vm1, %v220_v23  ;;  %v1159_v23 = vmax.f32 %v895_v41, 0.0  ;;  %v1154_v41 = vmax.f32 %v2371_v62, 0.0  ;;  %v1150_v62 = vmax.f32 %v2296_v22, 0.0  ;;  %v1209_v22 = vmax.f32 %v2441_v44, 0.0 }
 0x1cd   : > { %v1204_v44 = vmax.f32 %v2323_v34, 0.0  ;;  %v1199_v34 = vmax.f32 %v2231_v52, 0.0 }
 0x1d1   : > { %v2521_v11 = vpop.f32.mrf.mxu0  ;;  %v904_v19 = vpop.f32.mrf.mxu1 }
 0x1d2   : > { %v1162_v9 = vmax.f32 %v904_v19, 0.0  ;;  %v2535_v19 = vpop.f32.mrf.mxu3 }
 0x1d4   : > { %1571 = vmatmul.msk.f32.gmra.mxu0 %vm310_vm1, %v221_v24  ;;  %1318 = vmatpush.msra.mxu1 %v1162_v9  ;;  %v2538_v24 = vpop.f32.mrf.mxu2  ;;  %v1149_v9 = vmax.f32 %v2278_v13, 0.0  ;;  %v1208_v13 = vmax.f32 %v2413_v20, 0.0  ;;  %v1203_v20 = vmax.f32 %v2307_v26, 0.0  ;;  %v1198_v26 = vmax.f32 %v2211_v42, 0.0 }
 0x1d6   : > { %1319 = vmatpush.msra.mxu1 %v1161_v32  ;;  %v1153_v32 = vmax.f32 %v2349_v49, 0.0  ;;  %v1148_v49 = vmax.f32 %v2260_v8, 0.0  ;;  %v1207_v8 = vmax.f32 %v2385_v17, 0.0  ;;  %v1202_v17 = vmax.f32 %v2289_v18, 0.0 }
 0x1d7   : > { %v1197_v18 = vmax.f32 %v2191_v35, 0.0 }
 0x1d8   : > { %1320 = vmatpush.msra.mxu1 %v1160_v55 }
 0x1d9   : > { %v2531_v59 = vpop.f32.mrf.mxu0  ;;  %v2592_v21 = vpop.f32.mrf.mxu1 }
 0x1da   : > { %1321 = vmatpush.msra.mxu1 %v1159_v23 }
 0x1dc   : > { %1322 = vmatpush.msra.mxu1 %v1158_v0  ;;  %v2545_v0 = vpop.f32.mrf.mxu3  ;;  %v2548_v27 = vpop.f32.mrf.mxu2 }
 0x1de   : > { %1323 = vmatpush.msra.mxu1 %v1157_v6 }
 0x1e0   : > { %1324 = vmatpush.msra.mxu1 %v1156_v30 }
 0x1e1   : > { %v2541_v33 = vpop.f32.mrf.mxu0 }
 0x1e2   : > { %1325 = vmatpush.msra.mxu1 %v1155_v51 }
 0x1e4   : > { %1326 = vmatpush.msra.mxu1 %v1154_v41  ;;  %v2557_v55 = vpop.f32.mrf.mxu3  ;;  %v2559_v23 = vpop.f32.mrf.mxu2 }
 0x1e6   : > { %1327 = vmatpush.msra.mxu1 %v1153_v32 }
 0x1e8   : > { %1328 = vmatpush.msra.mxu1 %v1152_v5 }
 0x1e9   : > { %v2550_v6 = vpop.f32.mrf.mxu0 }
 0x1ea   : > { %1329 = vmatpush.msra.mxu1 %v1151_v48 }
 0x1ec   : > { %1330 = vmatpush.msra.mxu1 %v1150_v62  ;;  %v2566_v51 = vpop.f32.mrf.mxu3  ;;  %v2568_v41 = vpop.f32.mrf.mxu2 }
 0x1ee   : > { %1331 = vmatpush.msra.mxu1 %v1149_v9 }
 0x1f0   : > { %1332 = vmatpush.msra.mxu1 %v1148_v49 }
 0x1f1   : > { %v796_v31 = vpop.f32.mrf.mxu0 }
 0x1f2   : > { %1333 = vmatpush.msra.mxu1 %v1147_v39 }
 0x1f4   : > { %1378 = vmatpush.msrb.mxu1 %v1210_v36  ;;  %v2575_v5 = vpop.f32.mrf.mxu3  ;;  %v2577_v48 = vpop.f32.mrf.mxu2 }
 0x1f6   : > { %1379 = vmatpush.msrb.mxu1 %v1209_v22 }
 0x1f8   : > { %1380 = vmatpush.msrb.mxu1 %v1208_v13  ;;  %v1126_v13 = vmax.f32 %v796_v31, 0.0 }
 0x1f9   : > { %v799_v30 = vpop.f32.mrf.mxu0 }
 0x1fa   : > { %1381 = vmatpush.msrb.mxu1 %v1207_v8  ;;  %v1127_v22 = vmax.f32 %v799_v30, 0.0 }
 0x1fc   : > { %1382 = vmatpush.msrb.mxu1 %v1206_v56  ;;  %v2584_v9 = vpop.f32.mrf.mxu3  ;;  %v2586_v49 = vpop.f32.mrf.mxu2  ;;  %v1125_v56 = vmax.f32 %v2550_v6, 0.0 }
 0x1fe   : > { %1383 = vmatpush.msrb.mxu1 %v1205_v16  ;;  %v1124_v16 = vmax.f32 %v2541_v33, 0.0  ;;  %v1120_v33 = vmax.f32 %v2502_v50, 0.0  ;;  %v1115_v50 = vmax.f32 %v2393_v25, 0.0 }
 0x200   : > { %1384 = vmatpush.msrb.mxu1 %v1204_v44  ;;  %v1123_v44 = vmax.f32 %v2531_v59, 0.0  ;;  %v1119_v59 = vmax.f32 %v2488_v40, 0.0  ;;  %v1178_v40 = vmax.f32 %v2529_v58, 0.0  ;;  %v1174_v58 = vmax.f32 %v2481_v2, 0.0 }
 0x201   : > { %v802_v32 = vpop.f32.mrf.mxu0 }
 0x202   : > { %1385 = vmatpush.msrb.mxu1 %v1203_v20  ;;  %v1128_v42 = vmax.f32 %v802_v32, 0.0  ;;  %v1122_v20 = vmax.f32 %v2521_v11, 0.0  ;;  %v2605_v32 = vpop.f32.mrf.mxu1  ;;  %v1118_v11 = vmax.f32 %v2474_v29, 0.0  ;;  %v1243_v29 = vld.sshfl [vmem:[#allocation1 + $0x8] sm:$0xff pattern:$0x75316420] }
 0x204   : > { %1386 = vmatpush.msrb.mxu1 %v1202_v17  ;;  %v2590_v28 = vpop.f32.mrf.mxu3  ;;  %v2594_v8 = vpop.f32.mrf.mxu2  ;;  %v1121_v17 = vmax.f32 %v2513_v37, 0.0 }
 0x206   : > { %1387 = vmatpush.msrb.mxu1 %v1201_v54 }
 0x208   : > { %1388 = vmatpush.msrb.mxu1 %v1200_v45  ;;  %v1117_v45 = vmax.f32 %v2449_v4, 0.0  ;;  %v1177_v4 = vmax.f32 %v2519_v10, 0.0  ;;  %v1172_v10 = vmax.f32 %v2436_v57, 0.0  ;;  %v1229_v57 = vld [vmem:[%s2717_s2 + $0x10] sm:$0xff] }
 0x209   : > { %v805_v62 = vpop.f32.mrf.mxu0  ;;  %1239 = vst [vmem:[#allocation1 + $0x20] ss:$2 sm:$0xff] %v1229_v57 }
 0x20a   : > { %1389 = vmatpush.msrb.mxu1 %v1199_v34  ;;  %v1129_v36 = vmax.f32 %v805_v62, 0.0  ;;  %v1116_v34 = vmax.f32 %v2421_v47, 0.0  ;;  %v1175_v47 = vmax.f32 %v2495_v12, 0.0  ;;  %v1171_v12 = vmax.f32 %v2408_v38, 0.0 }
 0x20b   : > { %v1168_v38 = vmax.f32 %v2338_v43, 0.0 }
 0x20c   : > { %1390 = vmatpush.msrb.mxu1 %v1198_v26  ;;  %v2602_v31 = vpop.f32.mrf.mxu3  ;;  %v2607_v6 = vpop.f32.mrf.mxu2 }
 0x20d   : > { %v913_v26 = vpop.f32.mrf.mxu1 }
 0x20e   : > { %1391 = vmatpush.msrb.mxu1 %v1197_v18 }
 0x210   : > { %1392 = vmatpush.msrb.mxu1 %v1196_v60  ;;  %v1176_v60 = vmax.f32 %v2509_v61, 0.0  ;;  %v1228_v61 = vld [vmem:[%s2717_s2 + $0x8] sm:$0xff] }
 0x211   : > { %v808_v39 = vpop.f32.mrf.mxu0  ;;  %1237 = vst [vmem:[#allocation1 + $0x10] ss:$2 sm:$0xff] %v1228_v61  ;;  %v1217_v61 = vmax.f32 %v2557_v55, 0.0  ;;  %v1214_v55 = vmax.f32 %v2526_v46, 0.0 }
 0x212   : > { %1393 = vmatpush.msrb.mxu1 %v1195_v1  ;;  %v1130_v52 = vmax.f32 %v808_v39, 0.0 }
 0x214   : > { %1278 = vmatpush.msrb.mxu2 %v1130_v52  ;;  %v2615_v37 = vpop.f32.mrf.mxu3  ;;  %v2618_v62 = vpop.f32.mrf.mxu2 }
 0x215   : > { %v916_v39 = vpop.f32.mrf.mxu1 }
 0x216   : > { %1279 = vmatpush.msrb.mxu2 %v1129_v36  ;;  %v1173_v36 = vmax.f32 %v2464_v15, 0.0  ;;  %v1169_v15 = vmax.f32 %v2360_v53, 0.0 }
 0x218   : > { %1280 = vmatpush.msrb.mxu2 %v1128_v42  ;;  %v1170_v42 = vmax.f32 %v2382_v3, 0.0  ;;  %v1165_v3 = vmax.f32 %v913_v26, 0.0  ;;  %v1245_v53 = vld.sshfl [vmem:[#allocation1 + $0x18] sm:$0xff pattern:$0x75316420] }
 0x219   : > { %v2588_v35 = vpop.f32.mrf.mxu0  ;;  %1334 = vmatmul.f32.vlgmr.msra.gmra.mxu1 %v1245_v53 }
 0x21a   : > { %1281 = vmatpush.msrb.mxu2 %v1127_v22 }
 0x21c   : > { %1282 = vmatpush.msrb.mxu2 %v1126_v13  ;;  %v1090_v1 = vpop.f32.mrf.mxu3  ;;  %v2627_v25 = vpop.f32.mrf.mxu2 }
 0x21d   : > { %v919_v13 = vpop.f32.mrf.mxu1  ;;  %v1224_v26 = vmax.f32 %v1090_v1, 0.0 }
 0x21e   : > { %1283 = vmatpush.msrb.mxu2 %v1125_v56 }
 0x220   : > { %1284 = vmatpush.msrb.mxu2 %v1124_v16  ;;  %v1167_v16 = vmax.f32 %v919_v13, 0.0  ;;  %v2726_v13 = vld [vmem:[#allocation6_spill] sm:$0xff] }
 0x221   : > { %v2599_v30 = vpop.f32.mrf.mxu0  ;;  %v1211_v57 = vmax.f32 %v2726_v13, 0.0 }
 0x222   : > { %1285 = vmatpush.msrb.mxu2 %v1123_v44  ;;  %v1166_v44 = vmax.f32 %v916_v39, 0.0  ;;  %v1221_v39 = vmax.f32 %v2590_v28, 0.0  ;;  %v1218_v28 = vmax.f32 %v2566_v51, 0.0 }
 0x224   : > { %1286 = vmatpush.msrb.mxu2 %v1122_v20  ;;  %v1093_v2 = vpop.f32.mrf.mxu3  ;;  %v2637_v56 = vpop.f32.mrf.mxu2 }
 0x225   : > { %v1225_v43 = vmax.f32 %v1093_v2, 0.0 }
 0x226   : > { %1287 = vmatpush.msrb.mxu2 %v1121_v17 }
 0x228   : > { %1288 = vmatpush.msrb.mxu2 %v1120_v33 }
 0x229   : > { %v2611_v54 = vpop.f32.mrf.mxu0 }
 0x22a   : > { %1289 = vmatpush.msrb.mxu2 %v1119_v59  ;;  %v1164_v59 = vmax.f32 %v2605_v32, 0.0  ;;  %v1223_v32 = vmax.f32 %v2615_v37, 0.0  ;;  %v1230_v37 = vld [vmem:[%s2717_s2 + $0x18] sm:$0xff] }
 0x22b   : > { %1241 = vst [vmem:[#allocation1 + $0x30] ss:$2 sm:$0xff] %v1230_v37 }
 0x22c   : > { %1290 = vmatpush.msrb.mxu2 %v1118_v11  ;;  %v1096_v17 = vpop.f32.mrf.mxu3  ;;  %v2644_v33 = vpop.f32.mrf.mxu2 }
 0x22d   : > { %v1226_v11 = vmax.f32 %v1096_v17, 0.0  ;;  %v1780_v17 = vmov 0  }
 0x22e   : > { %1291 = vmatpush.msrb.mxu2 %v1117_v45  ;;  %v1163_v45 = vmax.f32 %v2592_v21, 0.0  ;;  %v1222_v21 = vmax.f32 %v2602_v31, 0.0  ;;  %v1219_v31 = vmax.f32 %v2575_v5, 0.0  ;;  %v1193_v5 = vmax.f32 %v2107_v7, 0.0  ;;  %1711 = vset.pattern.permute.xlu0 %v1780_v17 }
 0x22f   : > { %v1213_v7 = vmax.f32 %v2511_v63, 0.0  ;;  %v1186_v63 = vmax.f32 %v2607_v6, 0.0  ;;  %v1179_v6 = vmax.f32 %v2538_v24, 0.0 }
 0x230   : > { %1292 = vmatpush.msrb.mxu2 %v1116_v34  ;;  %v1246_v34 = vld.sshfl [vmem:[#allocation1 + $0x20] sm:$0xff pattern:$0x75316420] }
 0x231   : > { %v2622_v18 = vpop.f32.mrf.mxu0 }
 0x232   : > { %1293 = vmatpush.msrb.mxu2 %v1115_v50  ;;  %v1134_v1 = vmax.f32 %v2622_v18, 0.0  ;;  %v1131_v18 = vmax.f32 %v2588_v35, 0.0  ;;  %v1248_v51 = vld.sshfl [vmem:[#allocation1 + $0x30] sm:$0xff pattern:$0x75316420]  ;;  %v1215_v35 = vmax.f32 %v2535_v19, 0.0 }
 0x233   : > { %1294 = vmatmul.f32.vlgmr.msrb.gmra.mxu2 %v1243_v29  ;;  %1394 = vmatmul.f32.vlgmr.msrb.gmra.mxu1 %v1248_v51  ;;  %v1188_v19 = vmax.f32 %v2627_v25, 0.0  ;;  %v1249_v46 = vld.sshfl [vmem:[#allocation1 + $0x38] sm:$0xff pattern:$0x75316420]  ;;  %v1183_v25 = vmax.f32 %v2577_v48, 0.0 }
 0x234   : > { %1338 = vmatpush.msra.mxu2 %v1178_v40 }
 0x236   : > { %1339 = vmatpush.msra.mxu2 %v1177_v4 }
 0x238   : > { %1340 = vmatpush.msra.mxu2 %v1176_v60  ;;  %v991_v60 = vpop.f32.mrf.mxu2 }
 0x239   : > { %v823_v52 = vpop.f32.mrf.mxu0 }
 0x23a   : > { %1341 = vmatpush.msra.mxu2 %v1175_v47  ;;  %v1135_v47 = vmax.f32 %v823_v52, 0.0  ;;  %v1132_v52 = vmax.f32 %v2599_v30, 0.0 }
 0x23c   : > { %1342 = vmatpush.msra.mxu2 %v1174_v58  ;;  %v1220_v58 = vmax.f32 %v2584_v9, 0.0 }
 0x23e   : > { %1343 = vmatpush.msra.mxu2 %v1173_v36  ;;  %v1133_v36 = vmax.f32 %v2611_v54, 0.0  ;;  %v1194_v54 = vmax.f32 %v2129_v14, 0.0  ;;  %v1191_v14 = vmax.f32 %v991_v60, 0.0 }
 0x240   : > { %1344 = vmatpush.msra.mxu2 %v1172_v10  ;;  %v994_v9 = vpop.f32.mrf.mxu2  ;;  %v1244_v10 = vld.sshfl [vmem:[#allocation1 + $0x10] sm:$0xff pattern:$0x75316420] }
 0x241   : > { %v826_v22 = vpop.f32.mrf.mxu0  ;;  %v1192_v30 = vmax.f32 %v994_v9, 0.0 }
 0x242   : > { %1345 = vmatpush.msra.mxu2 %v1171_v12  ;;  %v1136_v4 = vmax.f32 %v826_v22, 0.0  ;;  %v1216_v12 = vmax.f32 %v2545_v0, 0.0  ;;  %v1189_v0 = vmax.f32 %v2637_v56, 0.0  ;;  %v2725_v22 = vld [vmem:[#allocation7_spill] sm:$0xff]  ;;  %v1185_v56 = vmax.f32 %v2594_v8, 0.0 }
 0x243   : > { %v1212_v2 = vmax.f32 %v2725_v22, 0.0  ;;  %v1247_v8 = vld.sshfl [vmem:[#allocation1 + $0x28] sm:$0xff pattern:$0x75316420] }
 0x244   : > { %1346 = vmatpush.msra.mxu2 %v1170_v42  ;;  %v1190_v42 = vmax.f32 %v2644_v33, 0.0 }
 0x246   : > { %1347 = vmatpush.msra.mxu2 %v1169_v15  ;;  %v1187_v15 = vmax.f32 %v2618_v62, 0.0  ;;  %v1181_v62 = vmax.f32 %v2559_v23, 0.0 }
 0x248   : > { %1348 = vmatpush.msra.mxu2 %v1168_v38  ;;  %v1184_v38 = vmax.f32 %v2586_v49, 0.0  ;;  %v1275_v49 = vpop.f32.mrf.mxu1 }
 0x249   : > { %v829_v20 = vpop.f32.mrf.mxu0 }
 0x24a   : > { %1349 = vmatpush.msra.mxu2 %v1167_v16  ;;  %v1137_v29 = vmax.f32 %v829_v20, 0.0  ;;  %v1182_v16 = vmax.f32 %v2568_v41, 0.0 }
 0x24c   : > { %1350 = vmatpush.msra.mxu2 %v1166_v44  ;;  %v1180_v44 = vmax.f32 %v2548_v27, 0.0 }
 0x24e   : > { %1351 = vmatpush.msra.mxu2 %v1165_v3 }
 0x250   : > { %1352 = vmatpush.msra.mxu2 %v1164_v59 }
 0x251   : > { %v832_v50 = vpop.f32.mrf.mxu0 }
 0x252   : > { %1353 = vmatpush.msra.mxu2 %v1163_v45  ;;  %v1138_v40 = vmax.f32 %v832_v50, 0.0 }
 0x253   : > { %1354 = vmatmul.f32.vlgmr.msra.gmra.mxu2 %v1246_v34 }
 0x254   : > { %1398 = vmatpush.msrb.mxu2 %v1226_v11  ;;  %1306 = vmatpush.msrb.mxu3 %v1138_v40 }
 0x256   : > { %1399 = vmatpush.msrb.mxu2 %v1225_v43  ;;  %1307 = vmatpush.msrb.mxu3 %v1137_v29 }
 0x258   : > { %1400 = vmatpush.msrb.mxu2 %v1224_v26  ;;  %1308 = vmatpush.msrb.mxu3 %v1136_v4 }
 0x25a   : > { %1401 = vmatpush.msrb.mxu2 %v1223_v32  ;;  %1309 = vmatpush.msrb.mxu3 %v1135_v47 }
 0x25c   : > { %1402 = vmatpush.msrb.mxu2 %v1222_v21  ;;  %1310 = vmatpush.msrb.mxu3 %v1134_v1 }
 0x25e   : > { %1403 = vmatpush.msrb.mxu2 %v1221_v39  ;;  %1311 = vmatpush.msrb.mxu3 %v1133_v36 }
 0x260   : > { %1404 = vmatpush.msrb.mxu2 %v1220_v58  ;;  %1312 = vmatpush.msrb.mxu3 %v1132_v52 }
 0x262   : > { %1405 = vmatpush.msrb.mxu2 %v1219_v31  ;;  %1313 = vmatpush.msrb.mxu3 %v1131_v18  ;;  %v1781_v31 = vmov 839922192  }
 0x263   : > { %1314 = vmatmul.f32.vlgmr.msrb.gmra.mxu3 %v1244_v10  ;;  %v1442_v52 = vunpack.c.l.s4 %v1781_v31 }
 0x264   : > { %1406 = vmatpush.msrb.mxu2 %v1218_v28  ;;  %1358 = vmatpush.msra.mxu3 %v1194_v54  ;;  %v2727_v54 = vld [vmem:[#allocation5_spill] sm:$0xff] }
 0x265   : > { %v1443_v28 = vunpack.c.0.s8 %v1442_v52 }
 0x266   : > { %1407 = vmatpush.msrb.mxu2 %v1217_v61  ;;  %1359 = vmatpush.msra.mxu3 %v1193_v5 }
 0x268   : > { %1408 = vmatpush.msrb.mxu2 %v1216_v12  ;;  %1360 = vmatpush.msra.mxu3 %v1192_v30 }
 0x26a   : > { %1409 = vmatpush.msrb.mxu2 %v1215_v35  ;;  %1361 = vmatpush.msra.mxu3 %v1191_v14 }
 0x26c   : > { %1410 = vmatpush.msrb.mxu2 %v1214_v55  ;;  %1362 = vmatpush.msra.mxu3 %v1190_v42 }
 0x26e   : > { %1411 = vmatpush.msrb.mxu2 %v1213_v7  ;;  %1363 = vmatpush.msra.mxu3 %v1189_v0 }
 0x270   : > { %1412 = vmatpush.msrb.mxu2 %v1212_v2  ;;  %1364 = vmatpush.msra.mxu3 %v1188_v19 }
 0x272   : > { %1413 = vmatpush.msrb.mxu2 %v1211_v57  ;;  %1365 = vmatpush.msra.mxu3 %v1187_v15 }
 0x273   : > { %1414 = vmatmul.f32.vlgmr.msrb.gmra.mxu2 %v1249_v46 }
 0x274   : > { %1366 = vmatpush.msra.mxu3 %v1186_v63 }
 0x276   : > { %1367 = vmatpush.msra.mxu3 %v1185_v56 }
 0x278   : > { %1368 = vmatpush.msra.mxu3 %v1184_v38 }
 0x27a   : > { %1369 = vmatpush.msra.mxu3 %v1183_v25 }
 0x27c   : > { %1370 = vmatpush.msra.mxu3 %v1182_v16 }
 0x27e   : > { %1371 = vmatpush.msra.mxu3 %v1181_v62 }
 0x280   : > { %1372 = vmatpush.msra.mxu3 %v1180_v44 }
 0x282   : > { %1373 = vmatpush.msra.mxu3 %v1179_v6 }
 0x283   : > { %1374 = vmatmul.f32.vlgmr.msra.gmra.mxu3 %v1247_v8 }
 0x296   : > { %v1335_v33 = vpop.f32.mrf.mxu1 }
 0x2b0   : > { %v1395_v27 = vpop.f32.mrf.mxu1 }
 0x2b6   : > { %v1295_v3 = vpop.f32.mrf.mxu2 }
 0x2b7   : > { %v1296_v20 = vadd.f32 %v1295_v3, %v1275_v49 }
 0x2d6   : > { %v1355_v59 = vpop.f32.mrf.mxu2 }
 0x2e6   : > { %v1315_v48 = vpop.f32.mrf.mxu3 }
 0x2e7   : > { %v1316_v41 = vadd.f32 %v1315_v48, %v1296_v20 }
 0x2e9   : > { %v1336_v23 = vadd.f32 %v1335_v33, %v1316_v41 }
 0x2eb   : > { %v1356_v11 = vadd.f32 %v1355_v59, %v1336_v23 }
 0x2f6   : > { %v1415_v43 = vpop.f32.mrf.mxu2 }
 0x306   : > { %v1375_v53 = vpop.f32.mrf.mxu3 }
 0x307   : > { %v1376_v45 = vadd.f32 %v1375_v53, %v1356_v11 }
 0x309   : > { %v1396_v24 = vadd.f32 %v1395_v27, %v1376_v45 }
 0x30b   : > { %v1416_v34 = vadd.f32 %v1415_v43, %v1396_v24 }
 0x30d   : > { %v1418_v50 = vsub.f32 0.0, %v1416_v34 }
 0x30f   : > { %v1419_v26 = vmul.f32 1.442695, %v1418_v50 }
 0x311   : > { %1712 = vpow2.f32 %v1419_v26 }
 0x317   : > { %v1713_v40 = vpop.eup %1712 }
 0x318   : > { %v1421_v29 = vadd.f32 1.0, %v1713_v40 }
 0x31a   : > { %1714 = vrcp.f32 %v1421_v29  ;;  %v1433_v21 = vand.u32 2147483648, %v1421_v29  ;;  %v1431_v39 = vand.u32 2147483647, %v1421_v29  ;;  %vm1427_vm3 = vweird.f32 %v1421_v29 }
 0x31c   : > { %v1434_v58 = vor.u32 1.1754944e-38, %v1433_v21  ;;  %vm1432_vm5 = vcmp.eq.f32.partialorder %v1431_v39, 8.507059e+37 }
 0x320   : > { %v1715_v32 = vpop.eup %1714 }
 0x321   : > { %v1423_v4 = vmul.f32 %v1715_v32, %v1421_v29  ;;  %vm1428_vm2 = vweird.f32 %v1715_v32 }
 0x322   : > { %vm1429_vm4 = vmor %vm1427_vm3, %vm1428_vm2 }
 0x323   : > { %v1424_v60 = vsub.f32 1.0, %v1423_v4 }
 0x325   : > { %v1425_v47 = vmul.f32 %v1715_v32, %v1424_v60 }
 0x327   : > { %v1426_v1 = vadd.f32 %v1715_v32, %v1425_v47 }
 0x329   : > { %v1430_v36 = vsel %vm1429_vm4, %v1715_v32, %v1426_v1 }
 0x32a   : > { %v1435_v37 = vsel %vm1432_vm5, %v1434_v58, %v1430_v36 }
 0x32b   : > { %1439 = vperm.xlu0 %1711, %v1435_v37  }
 0x39d   : > { %v1440_v18 = vpop.permute.xlu0 %1439 }
 0x39e   : > { %v1444_v9 = vperm.slane %v1440_v18, %v1443_v28 }
 0x3a0   : > { %v1446_v10 = vmul.f32 %v1444_v9, %v2727_v54 }
 0x3a2   : > { %1447 = vst [vmem:[%s163_s29] sm:$0xff] %v1446_v10 }
 0x3a3   : > { %1743 = shalt.err (!%p1740_p3)
}
 0x3a4   : > { %1670 = dma.vmem_to_hbm [thread:$0]  (%p1840_p5), %s1463_s30, 128, %s1465_s4, %s1449_s5  }
 0x3a5 PF: > { %p1676_p4 = scmp.ge.s32.totalorder %s1778_s15, 2  ;;  %s1476_s17 = sand.u32 1, %s1766_s12  }
 0x3a6   : > { %s1477_s19 = scalar_lea.sflag [#allocation3], %s1476_s17 }
 0x3a7   : > { %p1673_p7 = pnand %p1676_p4, %p1844_p6 }
 0x3a9   : > { %p1674_p8 = pneg %p1673_p7 }
 0x3ab   : > { %1761 = dma.done.wait (%p1674_p8), %s1477_s19, 128  }
 0x3ac   : > { %1763 = vsyncadd (%p1674_p8), %s1477_s19, 4294967168  ;;  %p13_p9 = scmp.ge.s32.totalorder %s1827_s18, 4   ;;  %s2728_s12 = smov %s1770_s13 }
 0x3ad   : > { %s2729_s13 = smov %s1774_s14  ;;  %s2730_s14 = smov %s1838_s21 }
 0x3ae   : > { %s2731_s15 = smov %s1827_s18  ;;  %15 = sbr.rel (!%p13_p9) target bundleno = 3 (0x3), region = 70 }
 0x3b3   :  { %1483 = vsyncpa [#allocation3], 1 }
 0x3b4   :  { %1485 = vsyncpa [#allocation3 + $0x1], 1 }

</bundles_post_ra>
